<compile_context>
chip_gen: v5e
topology: v5e:2x2
jax: 0.10.0
libtpu: 0.0.40
codegen_flags: <defaults>
</compile_context>

<pallas_src>
import math

import numpy as np
import jax
import jax.numpy as jnp
from jax.experimental import pallas as pl
from jax.experimental.pallas import tpu as pltpu


def _round_up(x, m):
    return ((x + m - 1) // m) * m


def _linear_sparse_kernel(x_ref, w_ref, m_ref, b_ref, o_ref):
    # x_ref: (tm, td)   w_ref / m_ref / b_ref: (1, td)   o_ref: (tm, td)
    scale = w_ref[...] * m_ref[...]                            # (1, td), VPU
    o_ref[...] = (x_ref[...] * scale + b_ref[...]).astype(o_ref.dtype)


def _choose_tiles(R, L, itemsize):
    # Lane tile: multiple of 128, capped at 2048 lanes.
    td = min(_round_up(L, 128), 2048)
    # Row tile: aim for ~1 MiB per input tile (the measured sweet spot for
    # mem-bound streaming), multiple of 8 sublanes, capped at 1024 rows.
    rows_target = max(8, (1 << 20) // (td * itemsize))
    tm = min(_round_up(R, 8), _round_up(rows_target, 8), 1024)
    return tm, td


def linear_sparse(x, weight, hard_mask, bias=None):
    """y = weight * x * hard_mask (+ bias), matching Linear_Sparse.forward."""
    orig_shape = x.shape
    D = int(orig_shape[-1])
    dtype = x.dtype
    M = int(np.prod(orig_shape[:-1])) if len(orig_shape) > 1 else 1
    N = M * D

    weight = jnp.asarray(weight, dtype)
    hard_mask = jnp.asarray(hard_mask, dtype)
    if bias is None:
        bias_vec = jnp.zeros((D,), dtype)
    else:
        # PyTorch broadcast: bias must be size-1 or equal to the last dim.
        bias_vec = jnp.broadcast_to(jnp.asarray(bias, dtype), (D,))

    # ---- choose a 2-D (R, L) view of the activations -----------------------
    # If D is already a multiple of 128 keep the natural (M, D) view (already
    # lane-dense).  Otherwise try to view the flat buffer as (N/L, L) with L a
    # multiple of both D and 128 so stores are unmasked full-lane vst and the
    # per-feature scale is just a tiled row.
    use_flat = False
    L = D
    if D > 0 and D % 128 != 0:
        period = (D * 128) // math.gcd(D, 128)        # lcm(D, 128)
        if period <= 2048 and N % period == 0:
            L = period
            while L * 2 <= 2048 and N % (L * 2) == 0:  # widen toward dense tiles
                L *= 2
            use_flat = True

    if use_flat:
        R = N // L
        x2d = x.reshape(R, L)
        reps = L // D
        w_row = jnp.tile(weight, reps).reshape(1, L)
        h_row = jnp.tile(hard_mask, reps).reshape(1, L)
        b_row = jnp.tile(bias_vec, reps).reshape(1, L)
    else:
        R, L = M, D
        x2d = x.reshape(R, L)
        w_row = weight.reshape(1, L)
        h_row = hard_mask.reshape(1, L)
        b_row = bias_vec.reshape(1, L)

    itemsize = jnp.dtype(dtype).itemsize
    tm, td = _choose_tiles(R, L, itemsize)
    grid = (pl.cdiv(R, tm), pl.cdiv(L, td))

    out = pl.pallas_call(
        _linear_sparse_kernel,
        out_shape=jax.ShapeDtypeStruct((R, L), dtype),
        grid_spec=pl.GridSpec(
            grid=grid,
            in_specs=[
                pl.BlockSpec((tm, td), lambda i, j: (i, j)),   # x tile (streamed)
                pl.BlockSpec((1, td), lambda i, j: (0, j)),    # weight row
                pl.BlockSpec((1, td), lambda i, j: (0, j)),    # hard_mask row
                pl.BlockSpec((1, td), lambda i, j: (0, j)),    # bias row
            ],
            out_specs=pl.BlockSpec((tm, td), lambda i, j: (i, j)),
        ),
        compiler_params=pltpu.CompilerParams(
            dimension_semantics=("parallel", "parallel"),
        ),
        cost_estimate=pl.CostEstimate(
            flops=3 * R * L,
            transcendentals=0,
            bytes_accessed=itemsize * (2 * R * L + 3 * L),
        ),
    )(x2d, w_row, h_row, b_row)

    return out.reshape(orig_shape)


def init_linear_sparse_params(key, input_size, output_size, with_bias=True):
    """Mirror the PyTorch __init__: weight ~ U[0,1)/input_size, bias = zeros,
    hard_mask = ones (settable by the caller)."""
    weight = jax.random.uniform(key, (input_size,), dtype=jnp.float32) / input_size
    bias = jnp.zeros((output_size,), dtype=jnp.float32) if with_bias else None
    hard_mask = jnp.ones((input_size,), dtype=jnp.float32)
    return weight, bias, hard_mask


# TODO(synk): set_hard_mask / CUDA-device bookkeeping in the PyTorch module is
# host-side state management, not a kernel; callers just pass hard_mask here.


if __name__ == "__main__":
    key = jax.random.PRNGKey(0)
    k_w, k_x, k_m, k_x2, k_w2 = jax.random.split(key, 5)

    # Shapes consistent with the module: batch=2, seq=8, input_size=output_size=32.
    batch, seq, input_size, output_size = 2, 8, 32, 32

    weight, bias, hard_mask = init_linear_sparse_params(k_w, input_size, output_size)
    # Exercise a non-trivial mask (as set_hard_mask would).
    hard_mask = jax.random.bernoulli(k_m, 0.5, (input_size,)).astype(jnp.float32)

    x = jax.random.normal(k_x, (batch, seq, input_size), dtype=jnp.float32)

    y = linear_sparse(x, weight, hard_mask, bias)
    jax.block_until_ready(y)

    # Reference in plain JAX.
    y_ref = weight * x * hard_mask + bias
    assert y.shape == (batch, seq, output_size)
    np.testing.assert_allclose(np.asarray(y), np.asarray(y_ref), rtol=1e-6, atol=1e-6)

    # Also exercise the masked-edge fallback path (odd feature dim, no bias).
    D2 = 40
    w2 = jax.random.uniform(k_w2, (D2,), dtype=jnp.float32) / D2
    m2 = jnp.ones((D2,), dtype=jnp.float32)
    x2 = jax.random.normal(k_x2, (5, D2), dtype=jnp.float32)
    y2 = linear_sparse(x2, w2, m2, bias=None)
    jax.block_until_ready(y2)
    np.testing.assert_allclose(np.asarray(y2), np.asarray(w2 * x2 * m2),
                               rtol=1e-6, atol=1e-6)

    print("KERNEL_OK")
</pallas_src>

<mosaic_0001>
module attributes {stable_mosaic.version = 11 : i64} {
  func.func @_linear_sparse_kernel(%arg0: i32, %arg1: i32, %arg2: memref<8x512xf32, #tpu.memory_space<vmem>>, %arg3: memref<1x512xf32, #tpu.memory_space<vmem>>, %arg4: memref<1x512xf32, #tpu.memory_space<vmem>>, %arg5: memref<1x512xf32, #tpu.memory_space<vmem>>, %arg6: memref<8x512xf32, #tpu.memory_space<vmem>>) attributes {dimension_semantics = [#tpu.dimension_semantics<parallel>, #tpu.dimension_semantics<parallel>], iteration_bounds = array<i64: 1, 1>, scalar_prefetch = 0 : i64, scratch_operands = 0 : i64, tpu.core_type = #tpu.core_type<tc>, window_params = [{transform_indices = @transform_0, window_bounds = array<i64: 8, 512>}, {transform_indices = @transform_1, window_bounds = array<i64: 1, 512>}, {transform_indices = @transform_2, window_bounds = array<i64: 1, 512>}, {transform_indices = @transform_3, window_bounds = array<i64: 1, 512>}, {transform_indices = @transform_4, window_bounds = array<i64: 8, 512>}]} {
    %c0 = arith.constant 0 : index
    %c0_0 = arith.constant 0 : index
    %0 = vector.load %arg3[%c0, %c0_0] : memref<1x512xf32, #tpu.memory_space<vmem>>, vector<1x512xf32>
    %c0_1 = arith.constant 0 : index
    %c0_2 = arith.constant 0 : index
    %1 = vector.load %arg4[%c0_1, %c0_2] : memref<1x512xf32, #tpu.memory_space<vmem>>, vector<1x512xf32>
    %2 = arith.mulf %0, %1 : vector<1x512xf32>
    %c0_3 = arith.constant 0 : index
    %c0_4 = arith.constant 0 : index
    %3 = vector.load %arg2[%c0_3, %c0_4] : memref<8x512xf32, #tpu.memory_space<vmem>>, vector<8x512xf32>
    %4 = vector.broadcast %2 : vector<1x512xf32> to vector<8x512xf32>
    %5 = arith.mulf %3, %4 : vector<8x512xf32>
    %c0_5 = arith.constant 0 : index
    %c0_6 = arith.constant 0 : index
    %6 = vector.load %arg5[%c0_5, %c0_6] : memref<1x512xf32, #tpu.memory_space<vmem>>, vector<1x512xf32>
    %7 = vector.broadcast %6 : vector<1x512xf32> to vector<8x512xf32>
    %8 = arith.addf %5, %7 : vector<8x512xf32>
    %c0_7 = arith.constant 0 : index
    %c0_8 = arith.constant 0 : index
    %9 = vector.load %arg6[%c0_7, %c0_8] : memref<8x512xf32, #tpu.memory_space<vmem>>, vector<8x512xf32>
    tpu.vector_store %arg6[%c0_7, %c0_8], %8 {strides = array<i32>} : memref<8x512xf32, #tpu.memory_space<vmem>>, vector<8x512xf32>,
    return
  }
  func.func @transform_0(%arg0: i32, %arg1: i32) -> (i32, i32) {
    %c0_i32 = arith.constant 0 : i32
    return %arg0, %arg1 : i32, i32
  }
  func.func @transform_1(%arg0: i32, %arg1: i32) -> (i32, i32) {
    %c0_i32 = arith.constant 0 : i32
    %c0_i32_0 = arith.constant 0 : i32
    return %c0_i32, %arg1 : i32, i32
  }
  func.func @transform_2(%arg0: i32, %arg1: i32) -> (i32, i32) {
    %c0_i32 = arith.constant 0 : i32
    %c0_i32_0 = arith.constant 0 : i32
    return %c0_i32, %arg1 : i32, i32
  }
  func.func @transform_3(%arg0: i32, %arg1: i32) -> (i32, i32) {
    %c0_i32 = arith.constant 0 : i32
    %c0_i32_0 = arith.constant 0 : i32
    return %c0_i32, %arg1 : i32, i32
  }
  func.func @transform_4(%arg0: i32, %arg1: i32) -> (i32, i32) {
    %c0_i32 = arith.constant 0 : i32
    return %arg0, %arg1 : i32, i32
  }
}

</mosaic_0001>

<bundles_post_ra>
// kernel: tpu_custom_call.1
= control target key start
LH: loop header
LB: loop body
LE: loop exit
PB: predicated region body
PF: predicated region fallthrough
CT: control target
= control target key end

     0   :  { %9 = vsyncpa [#allocation3], 0  ;;  %s582_s0 = inlined_call_operand.hbm [shape: f32[1,512], index: 0, kind: input, shape index: {}]   ;;  %s583_s1 = inlined_call_operand.hbm [shape: f32[1,512], index: 1, kind: input, shape index: {}]   ;;  %s584_s2 = inlined_call_operand.hbm [shape: f32[1,512], index: 2, kind: input, shape index: {}]   ;;  %s585_s3 = inlined_call_operand.hbm [shape: f32[1,512], index: 3, kind: input, shape index: {}]   ;;  %s586_s4 = inlined_call_operand.hbm [shape: f32[1,512], index: 4, kind: output, shape index: {}]  }
   0x1   :  { %10 = vsyncpa [#allocation6], 0 }
   0x2   :  { %11 = vsyncpa [#allocation9], 0 }
   0x3   :  { %12 = vsyncpa [#allocation4], 0  ;;  %s31_s17 = sshll.u32 %s583_s1, 4  ;;  %s32_s17 = int_to_ptr.hbm [resolvable:$true] %s31_s17 }
   0x4   :  { %16 = vsyncadd [#allocation3], 448  ;;  %s381_s18 = smov [#allocation5]   ;;  %s17_s22 = sshll.u32 %s582_s0, 4  ;;  %s18_s22 = int_to_ptr.hbm [resolvable:$true] %s17_s22 }
   0x5   :  { %s33_s19 = sshll.u32 %s381_s18, 4  ;;  %s382_s23 = smov [#allocation2]   ;;  %s34_s19 = int_to_ptr.vmem [resolvable:$true] %s33_s19 }
   0x6   :  { %36 = dma.hbm_to_vmem [thread:$0]  %s32_s17, 64, %s34_s19, [#allocation6]  }
   0x7   :  { %s19_s24 = sshll.u32 %s382_s23, 4  ;;  %s383_s25 = smov 64   ;;  %s20_s24 = int_to_ptr.vmem [resolvable:$true] %s19_s24 }
   0x8   :  { %s384_s26 = smov 4   ;;  %s42_s28 = sshll.u32 %s584_s2, 4  ;;  %s43_s28 = int_to_ptr.hbm [resolvable:$true] %s42_s28 }
   0x9   :  { %25 = dma.hbm_to_vmem [thread:$0]  %s18_s22, 64, %s20_s24, [#allocation3], %s383_s25, %s383_s25, %s384_s26  }
   0xa   :  { %s385_s29 = smov [#allocation7]   ;;  %s53_s6 = sshll.u32 %s585_s3, 4  ;;  %s54_s6 = int_to_ptr.hbm [resolvable:$true] %s53_s6 }
   0xb   :  { %s44_s30 = sshll.u32 %s385_s29, 4  ;;  %s386_s7 = smov [#allocation8]   ;;  %s45_s30 = int_to_ptr.vmem [resolvable:$true] %s44_s30 }
   0xc   :  { %47 = dma.hbm_to_vmem [thread:$0]  %s43_s28, 64, %s45_s30, [#allocation6]  }
   0xd   :  { %s55_s8 = sshll.u32 %s386_s7, 4  ;;  %s56_s8 = int_to_ptr.vmem [resolvable:$true] %s55_s8 }
   0xe   :  { %58 = dma.hbm_to_vmem [thread:$0]  %s54_s6, 64, %s56_s8, [#allocation9]  }
   0xf   :  { %373 = dma.done.wait [#allocation3], 512  }
  0x10   :  { %374 = vsyncadd [#allocation3], 4294966784 }
  0x11   :  { %375 = dma.done.wait [#allocation6], 128  }
  0x12   :  { %376 = vsyncadd [#allocation6], 4294967168 }
  0x13   :  { %377 = dma.done.wait [#allocation9], 64  }
  0x14   :  { %378 = vsyncadd [#allocation9], 4294967232  ;;  %v213_v0 = vlaneseq  ;;  %vm94_vm0 = vcmask 1040384   ;;  %vm96_vm1 = vcmask 1042434   ;;  %vm98_vm2 = vcmask 1041408  }
  0x15   :  { %vm100_vm3 = vcmask 1041409   ;;  %v75_v1 = vld [vmem:[#allocation5] sm:$0xf]  ;;  %v76_v2 = vld [vmem:[#allocation7] sm:$0xf]  ;;  %vm102_vm4 = vcmask 1043459  }
  0x16   :  { %vm104_vm5 = vcmask 1042433   ;;  %v77_v3 = vmul.f32 %v76_v2, %v75_v1  ;;  %v157_v4 = vld [vmem:[#allocation8] sm:$0xf]  ;;  %vm108_vm6 = vcmask 1044484   ;;  %vm110_vm7 = vcmask 1043458  }
  0x17   :  { %vm114_vm8 = vcmask 1045509   ;;  %v428_v5 = vperm.slane %v157_v4, 0  ;;  %v160_v6 = vperm.slane %v157_v4, 1  ;;  %v161_v7 = vperm.slane %v157_v4, 2  ;;  %v78_v20 = vld [vmem:[#allocation2] sm:$0xf] }
  0x18   :  { %v162_v8 = vperm.slane %v157_v4, 3  ;;  %vm430_vm9 = vcmp.lt.s32.totalorder %v213_v0, 512  ;;  %vm116_vm10 = vcmask 1044483   ;;  %v434_v10 = vperm.slane %v77_v3, 0  ;;  %v79_v34 = vld [vmem:[#allocation2 + $0x4] sm:$0xf] }
  0x19   :  { %v88_v11 = vperm.slane %v77_v3, 1  ;;  %v89_v12 = vperm.slane %v77_v3, 2  ;;  %v90_v13 = vperm.slane %v77_v3, 3  ;;  %v436_v14 = vrot.slane %v160_v6, 7  ;;  %v80_v39 = vld [vmem:[#allocation2 + $0x8] sm:$0xf] }
  0x1a   :  { %v438_v15 = vrot.slane %v161_v7, 6  ;;  %v440_v16 = vrot.slane %v162_v8, 5  ;;  %vm120_vm11 = vcmask 1046534   ;;  %vm122_vm12 = vcmask 1045508   ;;  %v81_v52 = vld [vmem:[#allocation2 + $0xc] sm:$0xf] }
  0x1b   :  { %v442_v17 = vrot.slane %v88_v11, 7  ;;  %v444_v18 = vrot.slane %v89_v12, 6  ;;  %v446_v19 = vrot.slane %v90_v13, 5  ;;  %v166_v21 = vsel %vm94_vm0, %v428_v5, %v436_v14  ;;  %v82_v62 = vld [vmem:[#allocation2 + $0x10] sm:$0xf] }
  0x1c   :  { %v167_v22 = vsel %vm96_vm1, %v438_v15, %v440_v16  ;;  %v169_v23 = vsel %vm100_vm3, %v428_v5, %v436_v14  ;;  %v170_v24 = vsel %vm102_vm4, %v438_v15, %v440_v16  ;;  %vm126_vm13 = vcmask 1046528  }
  0x1d   :  { %v95_v25 = vsel %vm94_vm0, %v434_v10, %v442_v17  ;;  %v97_v26 = vsel %vm96_vm1, %v444_v18, %v446_v19  ;;  %v168_v27 = vsel %vm98_vm2, %v166_v21, %v167_v22  ;;  %v101_v28 = vsel %vm100_vm3, %v434_v10, %v442_v17  ;;  %v83_v21 = vld [vmem:[#allocation2 + $0x14] sm:$0xf] }
  0x1e   :  { %vm128_vm14 = vcmask 1046533   ;;  %v99_v29 = vsel %vm98_vm2, %v95_v25, %v97_v26  ;;  %v103_v30 = vsel %vm102_vm4, %v444_v18, %v446_v19  ;;  %v171_v31 = vsel %vm104_vm5, %v169_v23, %v170_v24 }
  0x1f   :  { %v107_v32 = vsel %vm96_vm1, %v434_v10, %v442_v17  ;;  %v149_v33 = vmul.f32 %v99_v29, %v78_v20  ;;  %v105_v35 = vsel %vm104_vm5, %v101_v28, %v103_v30  ;;  %v172_v36 = vrot.slane %v171_v31, 1  ;;  %v84_v29 = vld [vmem:[#allocation2 + $0x18] sm:$0xf] }
  0x20   :  { %v109_v37 = vsel %vm108_vm6, %v444_v18, %v446_v19  ;;  %vm133_vm15 = vcmask 1045504   ;;  %v106_v38 = vrot.slane %v105_v35, 1  ;;  %v173_v41 = vsel %vm96_vm1, %v428_v5, %v436_v14 }
  0x21   :  { %v111_v40 = vsel %vm110_vm7, %v107_v32, %v109_v37  ;;  %v174_v42 = vsel %vm108_vm6, %v438_v15, %v440_v16  ;;  %v205_v43 = vadd.f32 %v168_v27, %v149_v33  ;;  %v113_v46 = vsel %vm102_vm4, %v434_v10, %v442_v17 }
  0x22   :  { %v112_v44 = vrot.slane %v111_v40, 2  ;;  %v175_v45 = vsel %vm110_vm7, %v173_v41, %v174_v42  ;;  %v150_v47 = vmul.f32 %v106_v38, %v79_v34  ;;  %v115_v49 = vsel %vm114_vm8, %v444_v18, %v446_v19 }
  0x23   :  { %v176_v48 = vrot.slane %v175_v45, 2  ;;  %v177_v50 = vsel %vm102_vm4, %v428_v5, %v436_v14  ;;  %vm138_vm1 = vcmask 1046529   ;;  %217 = vst.msk [vmem:[#allocation10] sm:$0xf] %vm430_vm9, %v205_v43  ;;  %v117_v53 = vsel %vm116_vm10, %v113_v46, %v115_v49 }
  0x24   :  { %v151_v51 = vmul.f32 %v112_v44, %v80_v39  ;;  %v178_v54 = vsel %vm114_vm8, %v438_v15, %v440_v16  ;;  %v119_v55 = vsel %vm108_vm6, %v434_v10, %v442_v17  ;;  %v206_v56 = vadd.f32 %v172_v36, %v150_v47 }
  0x25   :  { %v118_v57 = vrot.slane %v117_v53, 3  ;;  %v179_v58 = vsel %vm116_vm10, %v177_v50, %v178_v54  ;;  %v121_v59 = vsel %vm120_vm11, %v444_v18, %v446_v19  ;;  %v181_v0 = vsel %vm108_vm6, %v428_v5, %v436_v14 }
  0x26   :  { %v207_v60 = vadd.f32 %v176_v48, %v151_v51  ;;  %v180_v61 = vrot.slane %v179_v58, 3  ;;  %v123_v63 = vsel %vm122_vm12, %v119_v55, %v121_v59  ;;  %218 = vst.msk [vmem:[#allocation10 + $0x4] sm:$0xf] %vm430_vm9, %v206_v56  ;;  %v182_v3 = vsel %vm120_vm11, %v438_v15, %v440_v16 }
  0x27   :  { %v152_v1 = vmul.f32 %v118_v57, %v81_v52  ;;  %v124_v2 = vrot.slane %v123_v63, 4  ;;  %v125_v4 = vsel %vm114_vm8, %v434_v10, %v442_v17  ;;  %v183_v6 = vsel %vm122_vm12, %v181_v0, %v182_v3 }
  0x28   :  { %219 = vst.msk [vmem:[#allocation10 + $0x8] sm:$0xf] %vm430_vm9, %v207_v60  ;;  %v127_v7 = vsel %vm126_vm13, %v446_v19, %v444_v18  ;;  %v185_v8 = vsel %vm114_vm8, %v428_v5, %v436_v14  ;;  %v186_v11 = vsel %vm126_vm13, %v440_v16, %v438_v15  ;;  %v184_v20 = vrot.slane %v183_v6, 4 }
  0x29   :  { %v208_v12 = vadd.f32 %v180_v61, %v152_v1  ;;  %v153_v13 = vmul.f32 %v124_v2, %v82_v62  ;;  %v129_v22 = vsel %vm128_vm14, %v125_v4, %v127_v7  ;;  %v187_v24 = vsel %vm128_vm14, %v185_v8, %v186_v11 }
  0x2a   :  { %v130_v23 = vrot.slane %v129_v22, 5  ;;  %v131_v25 = vsel %vm120_vm11, %v434_v10, %v442_v17  ;;  %v132_v26 = vsel %vm94_vm0, %v444_v18, %v446_v19  ;;  %v188_v28 = vrot.slane %v187_v24, 5 }
  0x2b   :  { %220 = vst.msk [vmem:[#allocation10 + $0xc] sm:$0xf] %vm430_vm9, %v208_v12  ;;  %v209_v27 = vadd.f32 %v184_v20, %v153_v13  ;;  %v134_v30 = vsel %vm133_vm15, %v132_v26, %v131_v25  ;;  %v189_v31 = vsel %vm120_vm11, %v428_v5, %v436_v14  ;;  %v190_v34 = vsel %vm94_vm0, %v438_v15, %v440_v16 }
  0x2c   :  { %v154_v32 = vmul.f32 %v130_v23, %v83_v21  ;;  %v135_v33 = vrot.slane %v134_v30, 6  ;;  %v136_v35 = vsel %vm126_vm13, %v442_v17, %v434_v10  ;;  %v191_v36 = vsel %vm133_vm15, %v190_v34, %v189_v31  ;;  %v85_v17 = vld [vmem:[#allocation2 + $0x1c] sm:$0xf] }
  0x2d   :  { %221 = vst.msk [vmem:[#allocation10 + $0x10] sm:$0xf] %vm430_vm9, %v209_v27  ;;  %v137_v37 = vsel %vm100_vm3, %v444_v18, %v446_v19  ;;  %v193_v38 = vsel %vm126_vm13, %v436_v14, %v428_v5  ;;  %v194_v39 = vsel %vm100_vm3, %v438_v15, %v440_v16  ;;  %v192_v10 = vrot.slane %v191_v36, 6 }
  0x2e   :  { %v210_v40 = vadd.f32 %v188_v28, %v154_v32  ;;  %v155_v41 = vmul.f32 %v135_v33, %v84_v29  ;;  %v139_v42 = vsel %vm138_vm1, %v137_v37, %v136_v35  ;;  %v195_v44 = vsel %vm138_vm1, %v194_v39, %v193_v38 }
  0x2f   :  { %v140_v43 = vrot.slane %v139_v42, 7  ;;  %v196_v19 = vrot.slane %v195_v44, 7 }
  0x30   :  { %222 = vst.msk [vmem:[#allocation10 + $0x14] sm:$0xf] %vm430_vm9, %v210_v40  ;;  %v211_v18 = vadd.f32 %v192_v10, %v155_v41 }
  0x31   :  { %v156_v45 = vmul.f32 %v140_v43, %v85_v17 }
  0x32   :  { %223 = vst.msk [vmem:[#allocation10 + $0x18] sm:$0xf] %vm430_vm9, %v211_v18 }
  0x33   :  { %v212_v5 = vadd.f32 %v196_v19, %v156_v45 }
  0x35   :  { %224 = vst.msk [vmem:[#allocation10 + $0x1c] sm:$0xf] %vm430_vm9, %v212_v5 }
  0x36   :  { %228 = vsyncadd [#allocation4], 448  ;;  %s231_s9 = sshll.u32 %s586_s4, 4  ;;  %s387_s10 = smov [#allocation10]   ;;  %s232_s9 = int_to_ptr.hbm [resolvable:$true] %s231_s9 }
  0x37   :  { %s229_s11 = sshll.u32 %s387_s10, 4  ;;  %s230_s11 = int_to_ptr.vmem [resolvable:$true] %s229_s11 }
  0x38   :  { %237 = dma.vmem_to_hbm [thread:$0]  %s230_s11, 64, %s232_s9, [#allocation4], %s383_s25, %s383_s25, %s384_s26  }
  0x39   :  { %379 = dma.done.wait [#allocation4], 512  }
  0x3a   :  { %380 = vsyncadd [#allocation4], 4294966784 }
  0x3b   :  { %242 = vsyncpa [#allocation3], 1 }
  0x3c   :  { %243 = vsyncpa [#allocation6], 1 }
  0x3d   :  { %244 = vsyncpa [#allocation9], 1 }
  0x3e   :  { %245 = vsyncpa [#allocation4], 1 }

</bundles_post_ra>
